<compile_context>
chip_gen: v7x
topology: tpu7x:2x2x1
jax: 0.10.0
libtpu: 0.0.40
codegen_flags: <defaults>
</compile_context>

<pallas_src>
import functools
import math

import numpy as np
import jax
import jax.numpy as jnp
from jax.experimental import pallas as pl
from jax.experimental.pallas import tpu as pltpu

# (in_channels, out_channels, depthwise stride) for the efficient_conv blocks.
CFG = [(32, 64, 1), (64, 128, 2), (128, 256, 2), (256, 512, 1)]
IN_CHANNELS = 3
NUM_CLASSES = 10
NUM_CLASSES_PAD = 128          # lane-dense logits slab; sliced to NUM_CLASSES outside
H_IN = W_IN = 48               # input spatial size the kernel is specialized for
K_IM2COL = 9 * IN_CHANNELS     # 27
K_PAD = ((K_IM2COL + 7) // 8) * 8   # 32: unmasked transfers / clean MXU operand


def _geometry(h_in, w_in):
    """Static bookkeeping for the flat, never-compacted activation layout.

    Activations of one image always occupy L = H0*W0 rows; a feature-map
    position (r, c) of any stage lives at flat row r*rs + c*cs.  Depthwise taps
    are therefore plain row shifts by ky*rs + kx*cs; stride-2 blocks just
    double (rs, cs) instead of compacting rows.
    """
    h0 = (h_in + 2 - 3) // 2 + 1        # in_conv: k=3, s=2, p=1
    w0 = (w_in + 2 - 3) // 2 + 1
    lflat = h0 * w0
    h, w, rs, cs = h0, w0, w0, 1
    blocks = []
    for cin, cout, stride in CFG:
        ho = (h - 3) // stride + 1      # depthwise 3x3, padding=0 (as in the spec)
        wo = (w - 3) // stride + 1
        assert ho >= 1 and wo >= 1, "input spatial size too small for MobileNet"
        offsets = tuple(ky * rs + kx * cs for ky in range(3) for kx in range(3))
        rs_o, cs_o = rs * stride, cs * stride
        # Every tap of every *valid* output position stays inside the image's
        # own L-row segment, so the wrap-around of the rolls only lands in
        # garbage rows that no later valid tap (or the pooling matrix) reads.
        assert (ho - 1) * rs_o + (wo - 1) * cs_o + 2 * rs + 2 * cs < lflat
        blocks.append(dict(cin=cin, cout=cout, offsets=offsets))
        h, w, rs, cs = ho, wo, rs_o, cs_o
    return h0, w0, lflat, blocks, (h, w, rs, cs)


H0, W0, L_FLAT, BLOCKS, (H_F, W_F, RS_F, CS_F) = _geometry(H_IN, W_IN)


# --------------------- pltpu.roll direction (resolved once) ---------------------
# The depthwise taps need tap[p] = act[p + off].  Resolve pltpu.roll's rotation
# convention with a tiny probe kernel so the main kernel is correct either way.
_ROLL_TO_HIGHER = None     # True -> pltpu.roll(x, s)[i] == x[(i - s) % n] (np.roll)


def _roll_probe_kernel(x_ref, o_ref):
    o_ref[...] = pltpu.roll(x_ref[...], 1, axis=0)


def _resolve_roll_direction():
    global _ROLL_TO_HIGHER
    if _ROLL_TO_HIGHER is not None:
        return
    x = jax.lax.broadcasted_iota(jnp.float32, (8, 128), 0)
    y = pl.pallas_call(
        _roll_probe_kernel,
        out_shape=jax.ShapeDtypeStruct((8, 128), jnp.float32))(x)
    _ROLL_TO_HIGHER = bool(np.asarray(y)[0, 0] > 3.0)


def _shift_rows_up(x, off):
    """tap[p, :] = x[(p + off) % M, :]  (off is a static Python int)."""
    if off == 0:
        return x
    assert _ROLL_TO_HIGHER is not None, "call _resolve_roll_direction() first"
    m = x.shape[0]
    return pltpu.roll(x, (m - off) if _ROLL_TO_HIGHER else off, axis=0)


# ----------------------------- fused Pallas kernel -----------------------------

def _mobilenet_kernel(patches_ref, w_in_ref, b_in_ref, *rest):
    o_ref = rest[-1]
    pool_ref, w1_ref, w2_ref = rest[-4:-1]
    blk_refs = [rest[4 * i:4 * (i + 1)] for i in range(len(CFG))]

    # ---- in_conv: im2col matmul (BN scale pre-folded) + bias + ReLU ----
    y = jnp.dot(patches_ref[...], w_in_ref[...],
                preferred_element_type=jnp.float32)
    act = jnp.maximum(y + b_in_ref[...], 0.0)                     # (B*L, 32) f32

    # ---- efficient_conv blocks: dw 3x3 (+bias+ReLU) then 1x1 (+bias+ReLU) ----
    for blk, (wdw_ref, bdw_ref, wpw_ref, bpw_ref) in zip(BLOCKS, blk_refs):
        wdw = wdw_ref[...]                                        # (9, Cin), hoisted
        acc = act * wdw[0:1, :]                                   # tap (ky=0, kx=0)
        for k, off in enumerate(blk["offsets"]):
            if k == 0:
                continue
            acc = acc + _shift_rows_up(act, off) * wdw[k:k + 1, :]
        t = jnp.maximum(acc + bdw_ref[...], 0.0)                  # f32 VPU (v5e-safe)
        y = jnp.dot(t.astype(jnp.bfloat16), wpw_ref[...],
                    preferred_element_type=jnp.float32)           # pointwise 1x1
        act = jnp.maximum(y + bpw_ref[...], 0.0)

    # ---- classifier: avg-pool as one matmul, FC(512,256)+ReLU, FC(256,NC) ----
    pooled = jnp.dot(pool_ref[...], act.astype(jnp.bfloat16),
                     preferred_element_type=jnp.float32)          # (B, 512)
    h = jnp.maximum(jnp.dot(pooled.astype(jnp.bfloat16), w1_ref[...],
                            preferred_element_type=jnp.float32), 0.0)
    o_ref[0] = jnp.dot(h.astype(jnp.bfloat16), w2_ref[...],
                       preferred_element_type=jnp.float32)        # (B, 128)


def _pool_matrix(b_imgs):
    """Block-diagonal (B, B*L) matrix averaging the valid final positions."""
    p = np.zeros((b_imgs, b_imgs * L_FLAT), np.float32)
    inv = 1.0 / (H_F * W_F)
    for b in range(b_imgs):
        for r in range(H_F):
            for c in range(W_F):
                p[b, b * L_FLAT + r * RS_F + c * CS_F] = inv
    return jnp.asarray(p, jnp.bfloat16)


# ----------------------------- parameters -----------------------------

def init_params(key):
    """Deterministic synthetic parameters in kernel-ready (BN-folded) form."""

    def normal(k, shape, fan_in):
        return jax.random.normal(k, shape, jnp.float32) / math.sqrt(fan_in)

    def bn_fold(k, c):
        k1, k2, k3, k4 = jax.random.split(k, 4)
        gamma = 1.0 + 0.1 * jax.random.normal(k1, (c,), jnp.float32)
        beta = 0.1 * jax.random.normal(k2, (c,), jnp.float32)
        mean = 0.1 * jax.random.normal(k3, (c,), jnp.float32)
        var = jax.random.uniform(k4, (c,), jnp.float32, 0.5, 1.5)
        scale = gamma * jax.lax.rsqrt(var + 1e-5)      # eval-mode folded BN
        bias = beta - mean * scale
        return scale, bias

    keys = iter(jax.random.split(key, 32))
    p = {}
    # in_conv Conv2d(in_ch, 32, k=3, s=2, p=1, bias=False) as im2col (27, 32),
    # BN scale folded into the columns, K zero-padded 27 -> 32.
    w = normal(next(keys), (3, 3, IN_CHANNELS, 32), K_IM2COL).reshape(K_IM2COL, 32)
    s, b = bn_fold(next(keys), 32)
    w = jnp.concatenate([w * s[None, :],
                         jnp.zeros((K_PAD - K_IM2COL, 32), jnp.float32)], axis=0)
    p["w_in"], p["b_in"] = w.astype(jnp.bfloat16), b.reshape(1, 32)
    for i, (cin, cout, _stride) in enumerate(CFG):
        wdw = normal(next(keys), (9, cin), 9)          # depthwise, row k = ky*3+kx
        s, b = bn_fold(next(keys), cin)
        p[f"wdw{i}"] = wdw * s[None, :]                # f32 (VPU path)
        p[f"bdw{i}"] = b.reshape(1, cin)
        wpw = normal(next(keys), (cin, cout), cin)     # pointwise 1x1
        s, b = bn_fold(next(keys), cout)
        p[f"wpw{i}"] = (wpw * s[None, :]).astype(jnp.bfloat16)
        p[f"bpw{i}"] = b.reshape(1, cout)
    p["w1"] = normal(next(keys), (512, 256), 512).astype(jnp.bfloat16)
    w2 = normal(next(keys), (256, NUM_CLASSES), 256)
    p["w2"] = (jnp.zeros((256, NUM_CLASSES_PAD), jnp.float32)
               .at[:, :NUM_CLASSES].set(w2).astype(jnp.bfloat16))
    return p


# ----------------------------- forward wrapper -----------------------------

def _const_spec(arr):
    zeros = (0,) * arr.ndim
    return pl.BlockSpec(arr.shape, lambda i, _z=zeros: _z)


@functools.partial(jax.jit, static_argnames=("b_imgs",))
def _forward_impl(x_nchw, params, pool_mat, b_imgs):
    x = jnp.transpose(x_nchw, (0, 2, 3, 1)).astype(jnp.float32)   # NCHW -> NHWC
    n, h, w, cin = x.shape
    if (h, w, cin) != (H_IN, W_IN, IN_CHANNELS):
        raise ValueError(f"kernel specialized for {(H_IN, W_IN, IN_CHANNELS)}, "
                         f"got {(h, w, cin)}")
    n_pad = pl.cdiv(n, b_imgs) * b_imgs
    if n_pad != n:
        x = jnp.pad(x, ((0, n_pad - n), (0, 0), (0, 0), (0, 0)))

    # im2col for in_conv on the tiny 3-channel raw input (regular XLA glue).
    xp = jnp.pad(x, ((0, 0), (1, 1), (1, 1), (0, 0)))
    taps = []
    for ky in range(3):
        for kx in range(3):
            t = jax.lax.slice(
                xp, (0, ky, kx, 0),
                (n_pad, ky + 2 * (H0 - 1) + 1, kx + 2 * (W0 - 1) + 1, cin),
                (1, 2, 2, 1))
            taps.append(t.reshape(n_pad, H0 * W0, cin))
    patches = jnp.concatenate(taps, axis=-1)                      # (N, 576, 27)
    patches = jnp.pad(patches, ((0, 0), (0, 0), (0, K_PAD - K_IM2COL)))
    patches = patches.reshape(n_pad * L_FLAT, K_PAD).astype(jnp.bfloat16)

    grid_n = n_pad // b_imgs
    m_blk = b_imgs * L_FLAT

    inputs = [patches, params["w_in"], params["b_in"]]
    in_specs = [pl.BlockSpec((m_blk, K_PAD), lambda i: (i, 0)),
                _const_spec(params["w_in"]), _const_spec(params["b_in"])]
    for i in range(len(CFG)):
        for nm in ("wdw", "bdw", "wpw", "bpw"):
            arr = params[f"{nm}{i}"]
            inputs.append(arr)
            in_specs.append(_const_spec(arr))
    inputs += [pool_mat, params["w1"], params["w2"]]
    in_specs += [_const_spec(pool_mat), _const_spec(params["w1"]),
                 _const_spec(params["w2"])]

    out = pl.pallas_call(
        _mobilenet_kernel,
        out_shape=jax.ShapeDtypeStruct((grid_n, b_imgs, NUM_CLASSES_PAD),
                                       jnp.float32),
        grid=(grid_n,),
        in_specs=in_specs,
        out_specs=pl.BlockSpec((1, b_imgs, NUM_CLASSES_PAD), lambda i: (i, 0, 0)),
        compiler_params=pltpu.CompilerParams(
            dimension_semantics=("parallel",),
            vmem_limit_bytes=32 * 1024 * 1024),
    )(*inputs)
    return out.reshape(n_pad, NUM_CLASSES_PAD)[:, :NUM_CLASSES]


def mobilenet_forward(x_nchw, params, *, block_images=4):
    # TODO(synk): train-mode BatchNorm (batch statistics + running-stat updates)
    # is stateful and not implemented; eval-mode folded BN is used instead.
    _resolve_roll_direction()
    n = x_nchw.shape[0]
    b_imgs = max(1, min(block_images, n))
    pool_mat = _pool_matrix(b_imgs)
    return _forward_impl(x_nchw, params, pool_mat, b_imgs=b_imgs)[:n]


if __name__ == "__main__":
    key = jax.random.PRNGKey(0)
    pkey, xkey = jax.random.split(key)
    params = init_params(pkey)
    # NCHW input, like the PyTorch module (args.in_channels=3, 48x48 spatial).
    x = jax.random.normal(xkey, (8, IN_CHANNELS, H_IN, W_IN), jnp.float32)
    out = mobilenet_forward(x, params)        # 4 images per grid step, grid=(2,)
    jax.block_until_ready(out)
    assert out.shape == (8, NUM_CLASSES), out.shape
    assert bool(jnp.all(jnp.isfinite(out)))
    print("KERNEL_OK")
</pallas_src>

<mosaic_0001>
module attributes {stable_mosaic.version = 11 : i64} {
  func.func @_roll_probe_kernel(%arg0: memref<8x128xf32, #tpu.memory_space<vmem>>, %arg1: memref<8x128xf32, #tpu.memory_space<vmem>>) attributes {dimension_semantics = [], scalar_prefetch = 0 : i64, scratch_operands = 0 : i64, tpu.core_type = #tpu.core_type<tc>} {
    %c0 = arith.constant 0 : index
    %c0_0 = arith.constant 0 : index
    %0 = vector.load %arg0[%c0, %c0_0] : memref<8x128xf32, #tpu.memory_space<vmem>>, vector<8x128xf32>
    %c1_i32 = arith.constant 1 : i32
    %1 = tpu.dynamic_rotate %0 by %c1_i32 dim 0 : vector<8x128xf32>, i32 -> vector<8x128xf32>
    %c0_1 = arith.constant 0 : index
    %c0_2 = arith.constant 0 : index
    %2 = vector.load %arg1[%c0_1, %c0_2] : memref<8x128xf32, #tpu.memory_space<vmem>>, vector<8x128xf32>
    tpu.vector_store %arg1[%c0_1, %c0_2], %1 {strides = array<i32>} : memref<8x128xf32, #tpu.memory_space<vmem>>, vector<8x128xf32>,
    return
  }
}

</mosaic_0001>

<bundles_post_ra>
// kernel: tpu_custom_call.1
= control target key start
LH: loop header
LB: loop body
LE: loop exit
PB: predicated region body
PF: predicated region fallthrough
CT: control target
= control target key end

     0   :  { %6 = vsyncpa [#allocation3], 0  ;;  %s125_s0 = inlined_call_operand.hbm [shape: f32[8,128], index: 0, kind: input, shape index: {}]   ;;  %s126_s1 = inlined_call_operand.hbm [shape: f32[8,128], index: 1, kind: output, shape index: {}]  }
   0x1   :  { %7 = vsyncpa [#allocation4], 0  ;;  %s89_s6 = smov [#allocation2]   ;;  %s41_s10 = scalar_lea.hbm %s125_s0, 128 }
   0x2   :  { %s14_s7 = sshll.u32 %s89_s6, 4  ;;  %p42_p0 = scmp.ne.s32.totalorder %s125_s0, %s41_s10  ;;  %s15_s7 = int_to_ptr.vmem [resolvable:$true] %s14_s7 }
   0x3   :  { %p45_p1 = scmp.lt.u32.totalorder %s41_s10, %s125_s0 }
   0x5   :  { %p47_p2 = pnand %p45_p1, %p42_p0 }
   0x7   :  { %50 = shalt.err (!%p47_p2)
}
   0x8   :  { %s51_s15 = scalar_lea.vmem %s15_s7, 128  ;;  %p56_p4 = scmp.lt.s32.totalorder %s15_s7, %s15_s7 }
   0x9   :  { %p52_p3 = scmp.ne.s32.totalorder %s15_s7, %s51_s15  ;;  %p57_p5 = scmp.lt.s32.totalorder %s51_s15, %s51_s15 }
   0xb   :  { %p58_p6 = por %p57_p5, %p56_p4 }
   0xd   :  { %p59_p7 = pnand %p58_p6, %p52_p3 }
   0xf   :  { %62 = shalt.err (!%p59_p7)
}
  0x10   :  { %17 = dma.hbm_to_vmem [thread:$0]  %s125_s0, 128, %s15_s7, [#allocation3]  }
  0x11   :  { %85 = dma.done.wait [#allocation3], 128  }
  0x12   :  { %86 = vsyncadd [#allocation3], 4294967168  ;;  %s90_s18 = smov [#allocation5]   ;;  %v21_v0 = vld [vmem:[#allocation2] sm:$0xff] }
  0x13   :  { %s30_s19 = sshll.u32 %s90_s18, 4  ;;  %v22_v1 = vrot.slane %v21_v0, 7  ;;  %s31_s19 = int_to_ptr.vmem [resolvable:$true] %s30_s19 }
  0x14   :  { %s63_s20 = scalar_lea.vmem %s31_s19, 128  ;;  %p68_p9 = scmp.lt.s32.totalorder %s31_s19, %s31_s19 }
  0x15   :  { %23 = vst [vmem:[#allocation5] sm:$0xff] %v22_v1  ;;  %p64_p8 = scmp.ne.s32.totalorder %s31_s19, %s63_s20  ;;  %p69_p10 = scmp.lt.s32.totalorder %s63_s20, %s63_s20 }
  0x17   :  { %p70_p11 = por %p69_p10, %p68_p9 }
  0x19   :  { %p71_p12 = pnand %p70_p11, %p64_p8 }
  0x1b   :  { %74 = shalt.err (!%p71_p12)
}
  0x1c   :  { %s75_s23 = scalar_lea.hbm %s126_s1, 128 }
  0x1d   :  { %p76_p13 = scmp.ne.s32.totalorder %s126_s1, %s75_s23  ;;  %p79_p0 = scmp.lt.u32.totalorder %s75_s23, %s126_s1 }
  0x1f   :  { %p81_p1 = pnand %p79_p0, %p76_p13 }
  0x21   :  { %84 = shalt.err (!%p81_p1)
}
  0x22   :  { %33 = dma.vmem_to_hbm [thread:$0]  %s31_s19, 128, %s126_s1, [#allocation4]  }
  0x23   :  { %87 = dma.done.wait [#allocation4], 128  }
  0x24   :  { %88 = vsyncadd [#allocation4], 4294967168 }
  0x25   :  { %37 = vsyncpa [#allocation3], 1 }
  0x26   :  { %38 = vsyncpa [#allocation4], 1 }

</bundles_post_ra>
